<compile_context>
chip_gen: v7x
topology: tpu7x:2x2x1
jax: 0.10.0
libtpu: 0.0.40
codegen_flags: <defaults>
</compile_context>

<pallas_src>
import jax
import jax.numpy as jnp
from jax.experimental import pallas as pl
from jax.experimental.pallas import tpu as pltpu


# ---------------------------------------------------------------------------
# Recommended path: forward() is an identity read of the parameter, so the
# fastest "kernel" is no kernel at all.  Gradients flow trivially.
# ---------------------------------------------------------------------------
def lambda_forward(lam: jax.Array) -> jax.Array:
    """Exact equivalent of Lambda.forward(): return the (1,)-shaped param."""
    return lam


# ---------------------------------------------------------------------------
# Optional Pallas path (uniform kernel interface).  The scalar stays on the
# SMEM path end-to-end and the output aliases the input.
# ---------------------------------------------------------------------------
def _lambda_kernel(lam_ref, out_ref):
    # Scalar read + scalar store in SMEM; no vector load/store slots touched.
    out_ref[0] = lam_ref[0]


def lambda_forward_pallas(lam: jax.Array) -> jax.Array:
    """Pallas equivalent of Lambda.forward() routed through SMEM."""
    return pl.pallas_call(
        _lambda_kernel,
        out_shape=jax.ShapeDtypeStruct(lam.shape, lam.dtype),
        # Whole (1,) array lives in scalar memory: no padded (8,128) vreg tile,
        # no masked partial vector store.
        in_specs=[pl.BlockSpec(memory_space=pltpu.MemorySpace.SMEM)],
        out_specs=pl.BlockSpec(memory_space=pltpu.MemorySpace.SMEM),
        # Output buffer aliases the input buffer.
        input_output_aliases={0: 0},
    )(lam)


if __name__ == "__main__":
    # Deterministic parameter init, matching nn.Parameter(torch.Tensor([0.01])).
    # (PRNGKey created per instructions, though the init is a fixed constant.)
    _ = jax.random.PRNGKey(0)
    lam = jnp.array([0.01], dtype=jnp.float32)
    expected = jnp.array([0.01], dtype=jnp.float32)

    # Recommended (kernel-free) forward.
    out_fast = jax.block_until_ready(lambda_forward(lam))
    assert out_fast.shape == (1,)
    assert out_fast.dtype == jnp.float32
    assert jnp.allclose(out_fast, expected)

    # Pallas kernel variant (SMEM scalar path + aliased output).
    out_kernel = jax.block_until_ready(lambda_forward_pallas(lam))
    assert out_kernel.shape == (1,)
    assert out_kernel.dtype == jnp.float32
    assert jnp.allclose(out_kernel, expected)

    print("KERNEL_OK")
</pallas_src>

<mosaic_0001>
module attributes {stable_mosaic.version = 11 : i64} {
  func.func @_lambda_kernel(%arg0: memref<1xf32, #tpu.memory_space<smem>>, %arg1: memref<1xf32, #tpu.memory_space<smem>>) attributes {dimension_semantics = [], scalar_prefetch = 0 : i64, scratch_operands = 0 : i64, tpu.core_type = #tpu.core_type<tc>} {
    %c0 = arith.constant 0 : index
    %0 = memref.load %arg0[%c0] : memref<1xf32, #tpu.memory_space<smem>>
    %c0_0 = arith.constant 0 : index
    %1 = memref.load %arg1[%c0_0] : memref<1xf32, #tpu.memory_space<smem>>
    memref.store %0, %arg1[%c0_0] : memref<1xf32, #tpu.memory_space<smem>>
    return
  }
}

</mosaic_0001>

<bundles_post_ra>
// kernel: tpu_custom_call.1
= control target key start
LH: loop header
LB: loop body
LE: loop exit
PB: predicated region body
PF: predicated region fallthrough
CT: control target
= control target key end

     0   :  { %7 = vsyncpa [#allocation4], 0  ;;  %s65_s0 = inlined_call_operand.<no memory space> [shape: f32[1], index: 0, kind: input, shape index: {}, may-alias: {0,1}]   ;;  %s66_s1 = inlined_call_operand.hbm [shape: f32[1], index: 1, kind: output, shape index: {}, may-alias: {0,1}]  }
   0x1   :  { %12 = sst [smem:[#allocation3]] %s65_s0  ;;  %s27_s10 = scalar_lea.hbm %s66_s1, 16 }
   0x2   :  { %p28_p0 = scmp.ne.s32.totalorder %s66_s1, %s27_s10  ;;  %p31_p1 = scmp.lt.u32.totalorder %s27_s10, %s66_s1 }
   0x4   :  { %p33_p2 = pnand %p31_p1, %p28_p0 }
   0x6   :  { %36 = shalt.err (!%p33_p2)
}
   0x7   :  { %s39_s15 = smov [#allocation3]  }
   0x8   :  { %20 = dma.smem_to_hbm %s39_s15, 16, %s66_s1, [#allocation4]  }
   0x9   :  { %37 = dma.done.wait [#allocation4], 16  }
   0xa   :  { %38 = vsyncadd [#allocation4], 4294967280 }
   0xb   :  { %24 = sfence }
   0xc   :  { %25 = vsyncpa [#allocation4], 1 }

</bundles_post_ra>
